<compile_context>
chip_gen: v6e
topology: v6e:2x2x1
jax: 0.10.0
libtpu: 0.0.40
codegen_flags: <defaults>
</compile_context>

<pallas_src>
import functools

import jax
import jax.numpy as jnp
from jax.experimental import pallas as pl
from jax.experimental.pallas import tpu as pltpu

NEG_SLOPE = 0.01  # PyTorch F.leaky_relu default negative_slope


def _leaky_relu(x):
    return jnp.where(x >= 0, x, NEG_SLOPE * x)


def _round_up(x, m):
    return ((x + m - 1) // m) * m


def _target_surround_kernel(t_ref, s_ref, w1t_ref, w1s_ref, b1_ref,
                            w2_ref, w3t_ref, w3a_ref, b3_ref, out_ref,
                            *, approx_recip):
    t = t_ref[...]                                   # (TB, D)   f32
    s = s_ref[...]                                   # (TB, N, D) f32
    tb, n, d = s.shape
    h_dim = w1t_ref.shape[1]
    mxu_dtype = w1t_ref.dtype                        # bf16 (or f32)

    t_mx = t.astype(mxu_dtype)

    # linear1, split into target / surrounding halves (no lane-axis concat).
    # b1 is folded into the per-row target half: one (TB,H) add instead of an
    # extra (TB,N,H) broadcast add over the largest intermediate.
    t_h = (jnp.dot(t_mx, w1t_ref[...], preferred_element_type=jnp.float32)
           + b1_ref[...])                            # (TB, H)
    s_flat = s.reshape(tb * n, d)
    s_h = jnp.dot(s_flat.astype(mxu_dtype), w1s_ref[...],
                  preferred_element_type=jnp.float32).reshape(tb, n, h_dim)
    h = _leaky_relu(s_h + t_h[:, None, :])           # (TB, N, H) f32

    # linear2 as a VPU multiply + lane reduction.  b2 adds the same constant to
    # every score, softmax is invariant to it, so it is folded away (exact).
    scores = jnp.sum(h * w2_ref[...], axis=-1)       # (TB, N)

    # Numerically-stable softmax with deferred normalization: weight the
    # surrounding rows by the unnormalized exp (values in (0,1]) and scale once
    # per batch row by the (EUP) reciprocal of the denominator.
    scores = scores - jnp.max(scores, axis=-1, keepdims=True)
    e = jnp.exp(scores)                              # (TB, N)
    denom = jnp.sum(e, axis=-1, keepdims=True)       # (TB, 1)
    # TODO(synk): if a bundle dump shows the lane->sublane relayout of `e`
    # against (TB,N,D) dominating on the XLU, restructure scores as (TB*N, 1).
    attended = jnp.sum(e[:, :, None] * s, axis=1)    # (TB, D)  f32
    attended = attended * pl.reciprocal(denom, approx=approx_recip)

    # linear3, split the same way; (TB, D) dense output slab.
    out = (jnp.dot(t_mx, w3t_ref[...], preferred_element_type=jnp.float32)
           + jnp.dot(attended.astype(mxu_dtype), w3a_ref[...],
                     preferred_element_type=jnp.float32)
           + b3_ref[...])
    out_ref[...] = _leaky_relu(out).astype(out_ref.dtype)


def target_surround(target, surrounding, params, *, block_b=None,
                    matmul_dtype=jnp.bfloat16):
    B, D = target.shape
    _, N, _ = surrounding.shape
    w1, b1, w2, b2, w3, b3 = params
    H = w1.shape[1]
    del b2  # softmax is invariant to the linear2 bias (intentional, exact)

    # Split W1 / W3 into target / attended halves and cast the MXU weight
    # operands once in the wrapper (tiny, halves their VMEM footprint).
    # Biases and w2 stay f32 (VPU math).
    w1_t = w1[:D, :].astype(matmul_dtype)
    w1_s = w1[D:, :].astype(matmul_dtype)
    w3_t = w3[:D, :].astype(matmul_dtype)
    w3_a = w3[D:, :].astype(matmul_dtype)
    w2_row = w2.reshape(1, H).astype(jnp.float32)
    b1 = b1.reshape(1, H).astype(jnp.float32)
    b3 = b3.reshape(1, D).astype(jnp.float32)

    f32 = 4
    wt_item = jnp.dtype(matmul_dtype).itemsize

    # Per-chip VMEM budget: v5e/v6e have 128 MiB, v7x only 64 MiB per TC.  Raise
    # the scoped limit explicitly and size the tile against it with headroom.
    try:
        vmem_physical = int(pltpu.get_tpu_info().vmem_capacity_bytes)
    except Exception:
        vmem_physical = 64 * 1024 * 1024     # most constrained (v7x per-TC)
    vmem_limit = int(min(vmem_physical * 0.75, 96 * 1024 * 1024))

    if block_b is None:
        # Double-buffered weight blocks (default pipelining) + biases.
        # TODO(synk): pipeline_mode=pl.Buffered(1) (or a one-shot DMA to scratch)
        # for the block-invariant weights would reclaim half of this.
        weight_bytes = (2 * (2 * D * H + 2 * D * D) * wt_item
                        + 2 * (2 * H + 2 * D) * f32)
        # Per-batch-row working set: double-buffered f32 surrounding block, its
        # bf16 MXU copy, two live (N,H) f32 intermediates (s_h, h), the (N,)
        # score/exp temporaries and the small (D,)/(H,) row slabs.
        per_row = (2 * N * D * f32 + N * D * wt_item
                   + 2 * N * H * f32 + 4 * N * f32
                   + 8 * D * f32 + 4 * H * f32)
        budget = int(vmem_limit * 0.8) - weight_bytes
        block_b = max(8, (budget // per_row) // 8 * 8)
        # TODO(synk): for very large N*D (block_b=8 still busting VMEM) add an
        # inner "arbitrary" N grid axis with online-softmax accumulators.

        # Keep >= 2 (ideally >= 4) grid steps so the "parallel" batch axis can
        # be sharded across v7x's two TensorCores and still pipeline.
        if B >= 16:
            n_blocks_target = 4 if B >= 64 else 2
            block_b = min(block_b, _round_up(pl.cdiv(B, n_blocks_target), 8))

    # Never let the block's sublane extent exceed what the arrays provide as a
    # full dimension: B < 8 -> full-batch block; otherwise a multiple of 8 that
    # is <= B (the ragged tail block is handled by Pallas masked loads/stores).
    if B < 8:
        block_b = min(block_b, B)
    else:
        block_b = max(8, min(block_b, (B // 8) * 8))

    grid = (pl.cdiv(B, block_b),)

    cost = pl.CostEstimate(
        flops=(2 * B * N * D * H + 2 * B * D * H + 2 * B * N * H
               + 2 * B * N * D + 4 * B * D * D),
        transcendentals=B * N + B,
        bytes_accessed=(f32 * (B * N * D + 2 * B * D + 3 * H + 2 * D)
                        + wt_item * (2 * D * H + 2 * D * D)),
    )

    kernel = functools.partial(
        _target_surround_kernel,
        approx_recip=bool(jnp.dtype(matmul_dtype) != jnp.dtype(jnp.float32)),
    )

    # TODO(synk): for real model dims, pad D and H up to multiples of 128 once
    # on the weight side so the (block_b, D) output store is lane-dense; the
    # tiny demo dims (D=4, H=32) are left unpadded.
    out = pl.pallas_call(
        kernel,
        out_shape=jax.ShapeDtypeStruct((B, D), target.dtype),
        grid=grid,
        in_specs=[
            pl.BlockSpec((block_b, D), lambda b: (b, 0)),        # target slab
            pl.BlockSpec((block_b, N, D), lambda b: (b, 0, 0)),  # surrounding slab
            pl.BlockSpec((D, H), lambda b: (0, 0)),              # w1 target half
            pl.BlockSpec((D, H), lambda b: (0, 0)),              # w1 surrounding half
            pl.BlockSpec((1, H), lambda b: (0, 0)),              # b1
            pl.BlockSpec((1, H), lambda b: (0, 0)),              # w2 as a row
            pl.BlockSpec((D, D), lambda b: (0, 0)),              # w3 target half
            pl.BlockSpec((D, D), lambda b: (0, 0)),              # w3 attended half
            pl.BlockSpec((1, D), lambda b: (0, 0)),              # b3
        ],
        out_specs=pl.BlockSpec((block_b, D), lambda b: (b, 0)),
        compiler_params=pltpu.CompilerParams(
            dimension_semantics=("parallel",),
            vmem_limit_bytes=vmem_limit),
        cost_estimate=cost,
    )(target, surrounding, w1_t, w1_s, b1, w2_row, w3_t, w3_a, b3)
    return out


def reference(target, surrounding, params):
    """Pure-JAX reference mirroring the PyTorch forward."""
    w1, b1, w2, b2, w3, b3 = params
    B, D = target.shape
    N = surrounding.shape[1]
    t_exp = jnp.broadcast_to(target[:, None, :], (B, N, D))
    combined = jnp.concatenate([t_exp, surrounding], axis=2)      # (B, N, 2D)
    h = _leaky_relu(combined @ w1 + b1)                           # (B, N, H)
    scores = (h @ w2 + b2)[..., 0]                                # (B, N)
    attn = jax.nn.softmax(scores, axis=1)                         # (B, N)
    attended = jnp.einsum('bn,bnd->bd', attn, surrounding)        # (B, D)
    combo = jnp.concatenate([target, attended], axis=1)           # (B, 2D)
    return _leaky_relu(combo @ w3 + b3)                           # (B, D)


def init_params(key, input_dim, hidden_dim):
    ks = jax.random.split(key, 6)
    # Stored in (in, out) layout so the kernel does x @ W + b directly
    # (equivalent to PyTorch's x @ W^T + b with W of shape (out, in)).
    w1 = 0.1 * jax.random.normal(ks[0], (2 * input_dim, hidden_dim), jnp.float32)
    b1 = 0.1 * jax.random.normal(ks[1], (1, hidden_dim), jnp.float32)
    w2 = 0.1 * jax.random.normal(ks[2], (hidden_dim, 1), jnp.float32)
    b2 = 0.1 * jax.random.normal(ks[3], (1, 1), jnp.float32)
    w3 = 0.1 * jax.random.normal(ks[4], (2 * input_dim, input_dim), jnp.float32)
    b3 = 0.1 * jax.random.normal(ks[5], (1, input_dim), jnp.float32)
    return (w1, b1, w2, b2, w3, b3)


if __name__ == "__main__":
    B, N, D, H = 2, 8, 4, 32   # batch, #surrounding, input_dim, hidden_dim

    key = jax.random.PRNGKey(0)
    k_t, k_s, k_p = jax.random.split(key, 3)
    target = jax.random.normal(k_t, (B, D), jnp.float32)
    surrounding = jax.random.normal(k_s, (B, N, D), jnp.float32)
    params = init_params(k_p, D, H)

    ref = reference(target, surrounding, params)

    # Exact-semantics path (f32 MXU + exact reciprocal) at tight tolerance.
    out_f32 = jax.block_until_ready(
        target_surround(target, surrounding, params, matmul_dtype=jnp.float32))
    assert out_f32.shape == (B, D), out_f32.shape
    assert jnp.allclose(out_f32, ref, atol=1e-4, rtol=1e-4), (out_f32, ref)

    # Default bf16-MXU path; tolerance loosened for bf16 inputs + approx recip.
    out_bf16 = jax.block_until_ready(target_surround(target, surrounding, params))
    assert out_bf16.shape == (B, D), out_bf16.shape
    assert jnp.allclose(out_bf16, ref, atol=3e-2, rtol=3e-2), (out_bf16, ref)

    # Ragged batch + multi-step grid (grid=(2,), masked tail rows, no jnp.pad).
    B2 = 13
    k_t2, k_s2 = jax.random.split(jax.random.PRNGKey(1))
    target2 = jax.random.normal(k_t2, (B2, D), jnp.float32)
    surrounding2 = jax.random.normal(k_s2, (B2, N, D), jnp.float32)
    out2 = jax.block_until_ready(
        target_surround(target2, surrounding2, params, block_b=8))
    ref2 = reference(target2, surrounding2, params)
    assert out2.shape == (B2, D), out2.shape
    assert jnp.allclose(out2, ref2, atol=3e-2, rtol=3e-2), (out2, ref2)

    print("KERNEL_OK")
</pallas_src>

<mosaic_0001>
module attributes {stable_mosaic.version = 11 : i64} {
  func.func @_target_surround_kernel(%arg0: i32, %arg1: memref<2x4xf32, #tpu.memory_space<vmem>>, %arg2: memref<2x8x4xf32, #tpu.memory_space<vmem>>, %arg3: memref<4x32xf32, #tpu.memory_space<vmem>>, %arg4: memref<4x32xf32, #tpu.memory_space<vmem>>, %arg5: memref<1x32xf32, #tpu.memory_space<vmem>>, %arg6: memref<1x32xf32, #tpu.memory_space<vmem>>, %arg7: memref<4x4xf32, #tpu.memory_space<vmem>>, %arg8: memref<4x4xf32, #tpu.memory_space<vmem>>, %arg9: memref<1x4xf32, #tpu.memory_space<vmem>>, %arg10: memref<2x4xf32, #tpu.memory_space<vmem>>) attributes {dimension_semantics = [#tpu.dimension_semantics<parallel>], iteration_bounds = array<i64: 1>, scalar_prefetch = 0 : i64, scratch_operands = 0 : i64, tpu.core_type = #tpu.core_type<tc>, window_params = [{transform_indices = @transform_0, window_bounds = array<i64: 2, 4>}, {transform_indices = @transform_1, window_bounds = array<i64: 2, 8, 4>}, {pipeline_mode = #tpu.pipeline_mode<synchronous>, transform_indices = @transform_2, window_bounds = array<i64: 4, 32>}, {pipeline_mode = #tpu.pipeline_mode<synchronous>, transform_indices = @transform_3, window_bounds = array<i64: 4, 32>}, {pipeline_mode = #tpu.pipeline_mode<synchronous>, transform_indices = @transform_4, window_bounds = array<i64: 1, 32>}, {pipeline_mode = #tpu.pipeline_mode<synchronous>, transform_indices = @transform_5, window_bounds = array<i64: 1, 32>}, {pipeline_mode = #tpu.pipeline_mode<synchronous>, transform_indices = @transform_6, window_bounds = array<i64: 4, 4>}, {pipeline_mode = #tpu.pipeline_mode<synchronous>, transform_indices = @transform_7, window_bounds = array<i64: 4, 4>}, {pipeline_mode = #tpu.pipeline_mode<synchronous>, transform_indices = @transform_8, window_bounds = array<i64: 1, 4>}, {transform_indices = @transform_9, window_bounds = array<i64: 2, 4>}]} {
    %c0 = arith.constant 0 : index
    %c0_0 = arith.constant 0 : index
    %0 = vector.load %arg1[%c0, %c0_0] : memref<2x4xf32, #tpu.memory_space<vmem>>, vector<2x4xf32>
    %c0_1 = arith.constant 0 : index
    %c0_2 = arith.constant 0 : index
    %c0_3 = arith.constant 0 : index
    %1 = vector.load %arg2[%c0_1, %c0_2, %c0_3] : memref<2x8x4xf32, #tpu.memory_space<vmem>>, vector<2x8x4xf32>
    %c0_4 = arith.constant 0 : index
    %c0_5 = arith.constant 0 : index
    %2 = vector.load %arg3[%c0_4, %c0_5] : memref<4x32xf32, #tpu.memory_space<vmem>>, vector<4x32xf32>
    %cst = arith.constant dense<0.000000e+00> : vector<2x32xf32>
    %3 = tpu.matmul %0, %2, %cst {dimension_numbers = #tpu.dot_dimension_numbers<[1], [0], [0], [1], [0, 0, 1, 1], [], []>} : vector<2x4xf32>, vector<4x32xf32>, vector<2x32xf32> -> vector<2x32xf32>
    %c0_6 = arith.constant 0 : index
    %c0_7 = arith.constant 0 : index
    %4 = vector.load %arg5[%c0_6, %c0_7] : memref<1x32xf32, #tpu.memory_space<vmem>>, vector<1x32xf32>
    %5 = vector.broadcast %4 : vector<1x32xf32> to vector<2x32xf32>
    %6 = arith.addf %3, %5 : vector<2x32xf32>
    %7 = vector.shape_cast %1 : vector<2x8x4xf32> to vector<16x4xf32>
    %c0_8 = arith.constant 0 : index
    %c0_9 = arith.constant 0 : index
    %8 = vector.load %arg4[%c0_8, %c0_9] : memref<4x32xf32, #tpu.memory_space<vmem>>, vector<4x32xf32>
    %cst_10 = arith.constant dense<0.000000e+00> : vector<16x32xf32>
    %9 = tpu.matmul %7, %8, %cst_10 {dimension_numbers = #tpu.dot_dimension_numbers<[1], [0], [0], [1], [0, 0, 1, 1], [], []>} : vector<16x4xf32>, vector<4x32xf32>, vector<16x32xf32> -> vector<16x32xf32>
    %10 = vector.shape_cast %9 : vector<16x32xf32> to vector<2x8x32xf32>
    %11 = vector.shape_cast %6 : vector<2x32xf32> to vector<2x1x32xf32>
    %12 = vector.broadcast %11 : vector<2x1x32xf32> to vector<2x8x32xf32>
    %13 = arith.addf %10, %12 : vector<2x8x32xf32>
    %cst_11 = arith.constant 0.000000e+00 : f32
    %14 = vector.broadcast %cst_11 : f32 to vector<2x8x32xf32>
    %15 = arith.cmpf oge, %13, %14 : vector<2x8x32xf32>
    %cst_12 = arith.constant 0.00999999977 : f32
    %16 = vector.broadcast %cst_12 : f32 to vector<2x8x32xf32>
    %17 = arith.mulf %16, %13 : vector<2x8x32xf32>
    %18 = arith.select %15, %13, %17 : vector<2x8x32xi1>, vector<2x8x32xf32>
    %c0_13 = arith.constant 0 : index
    %c0_14 = arith.constant 0 : index
    %19 = vector.load %arg6[%c0_13, %c0_14] : memref<1x32xf32, #tpu.memory_space<vmem>>, vector<1x32xf32>
    %20 = vector.shape_cast %19 : vector<1x32xf32> to vector<1x1x32xf32>
    %21 = vector.broadcast %20 : vector<1x1x32xf32> to vector<2x8x32xf32>
    %22 = arith.mulf %18, %21 : vector<2x8x32xf32>
    %cst_15 = arith.constant dense<0.000000e+00> : vector<2x8xf32>
    %23 = vector.multi_reduction <add>, %22, %cst_15 [2] : vector<2x8x32xf32> to vector<2x8xf32>
    %cst_16 = arith.constant dense<0xFF800000> : vector<2xf32>
    %24 = vector.multi_reduction <maximumf>, %23, %cst_16 [1] : vector<2x8xf32> to vector<2xf32>
    %25 = vector.shape_cast %24 : vector<2xf32> to vector<2x1xf32>
    %26 = vector.broadcast %25 : vector<2x1xf32> to vector<2x8xf32>
    %27 = arith.subf %23, %26 : vector<2x8xf32>
    %28 = math.exp %27 : vector<2x8xf32>
    %cst_17 = arith.constant dense<0.000000e+00> : vector<2xf32>
    %29 = vector.multi_reduction <add>, %28, %cst_17 [1] : vector<2x8xf32> to vector<2xf32>
    %30 = vector.shape_cast %29 : vector<2xf32> to vector<2x1xf32>
    %31 = vector.shape_cast %28 : vector<2x8xf32> to vector<2x8x1xf32>
    %32 = vector.broadcast %31 : vector<2x8x1xf32> to vector<2x8x4xf32>
    %33 = arith.mulf %32, %1 : vector<2x8x4xf32>
    %cst_18 = arith.constant dense<0.000000e+00> : vector<2x4xf32>
    %34 = vector.multi_reduction <add>, %33, %cst_18 [1] : vector<2x8x4xf32> to vector<2x4xf32>
    %35 = tpu.reciprocal %30 : vector<2x1xf32> -> vector<2x1xf32>
    %36 = vector.broadcast %35 : vector<2x1xf32> to vector<2x4xf32>
    %37 = arith.mulf %34, %36 : vector<2x4xf32>
    %c0_19 = arith.constant 0 : index
    %c0_20 = arith.constant 0 : index
    %38 = vector.load %arg7[%c0_19, %c0_20] : memref<4x4xf32, #tpu.memory_space<vmem>>, vector<4x4xf32>
    %cst_21 = arith.constant dense<0.000000e+00> : vector<2x4xf32>
    %39 = tpu.matmul %0, %38, %cst_21 {dimension_numbers = #tpu.dot_dimension_numbers<[1], [0], [0], [1], [0, 0, 1, 1], [], []>} : vector<2x4xf32>, vector<4x4xf32>, vector<2x4xf32> -> vector<2x4xf32>
    %c0_22 = arith.constant 0 : index
    %c0_23 = arith.constant 0 : index
    %40 = vector.load %arg8[%c0_22, %c0_23] : memref<4x4xf32, #tpu.memory_space<vmem>>, vector<4x4xf32>
    %cst_24 = arith.constant dense<0.000000e+00> : vector<2x4xf32>
    %41 = tpu.matmul %37, %40, %cst_24 {dimension_numbers = #tpu.dot_dimension_numbers<[1], [0], [0], [1], [0, 0, 1, 1], [], []>} : vector<2x4xf32>, vector<4x4xf32>, vector<2x4xf32> -> vector<2x4xf32>
    %42 = arith.addf %39, %41 : vector<2x4xf32>
    %c0_25 = arith.constant 0 : index
    %c0_26 = arith.constant 0 : index
    %43 = vector.load %arg9[%c0_25, %c0_26] : memref<1x4xf32, #tpu.memory_space<vmem>>, vector<1x4xf32>
    %44 = vector.broadcast %43 : vector<1x4xf32> to vector<2x4xf32>
    %45 = arith.addf %42, %44 : vector<2x4xf32>
    %cst_27 = arith.constant 0.000000e+00 : f32
    %46 = vector.broadcast %cst_27 : f32 to vector<2x4xf32>
    %47 = arith.cmpf oge, %45, %46 : vector<2x4xf32>
    %cst_28 = arith.constant 0.00999999977 : f32
    %48 = vector.broadcast %cst_28 : f32 to vector<2x4xf32>
    %49 = arith.mulf %48, %45 : vector<2x4xf32>
    %50 = arith.select %47, %45, %49 : vector<2x4xi1>, vector<2x4xf32>
    %c0_29 = arith.constant 0 : index
    %c0_30 = arith.constant 0 : index
    %51 = vector.load %arg10[%c0_29, %c0_30] : memref<2x4xf32, #tpu.memory_space<vmem>>, vector<2x4xf32>
    tpu.vector_store %arg10[%c0_29, %c0_30], %50 {strides = array<i32>} : memref<2x4xf32, #tpu.memory_space<vmem>>, vector<2x4xf32>,
    return
  }
  func.func @transform_0(%arg0: i32) -> (i32, i32) {
    %c0_i32 = arith.constant 0 : i32
    %c0_i32_0 = arith.constant 0 : i32
    return %arg0, %c0_i32 : i32, i32
  }
  func.func @transform_1(%arg0: i32) -> (i32, i32, i32) {
    %c0_i32 = arith.constant 0 : i32
    %c0_i32_0 = arith.constant 0 : i32
    %c0_i32_1 = arith.constant 0 : i32
    return %arg0, %c0_i32, %c0_i32_0 : i32, i32, i32
  }
  func.func @transform_2(%arg0: i32) -> (i32, i32) {
    %c0_i32 = arith.constant 0 : i32
    %c0_i32_0 = arith.constant 0 : i32
    %c0_i32_1 = arith.constant 0 : i32
    return %c0_i32, %c0_i32_0 : i32, i32
  }
  func.func @transform_3(%arg0: i32) -> (i32, i32) {
    %c0_i32 = arith.constant 0 : i32
    %c0_i32_0 = arith.constant 0 : i32
    %c0_i32_1 = arith.constant 0 : i32
    return %c0_i32, %c0_i32_0 : i32, i32
  }
  func.func @transform_4(%arg0: i32) -> (i32, i32) {
    %c0_i32 = arith.constant 0 : i32
    %c0_i32_0 = arith.constant 0 : i32
    %c0_i32_1 = arith.constant 0 : i32
    return %c0_i32, %c0_i32_0 : i32, i32
  }
  func.func @transform_5(%arg0: i32) -> (i32, i32) {
    %c0_i32 = arith.constant 0 : i32
    %c0_i32_0 = arith.constant 0 : i32
    %c0_i32_1 = arith.constant 0 : i32
    return %c0_i32, %c0_i32_0 : i32, i32
  }
  func.func @transform_6(%arg0: i32) -> (i32, i32) {
    %c0_i32 = arith.constant 0 : i32
    %c0_i32_0 = arith.constant 0 : i32
    %c0_i32_1 = arith.constant 0 : i32
    return %c0_i32, %c0_i32_0 : i32, i32
  }
  func.func @transform_7(%arg0: i32) -> (i32, i32) {
    %c0_i32 = arith.constant 0 : i32
    %c0_i32_0 = arith.constant 0 : i32
    %c0_i32_1 = arith.constant 0 : i32
    return %c0_i32, %c0_i32_0 : i32, i32
  }
  func.func @transform_8(%arg0: i32) -> (i32, i32) {
    %c0_i32 = arith.constant 0 : i32
    %c0_i32_0 = arith.constant 0 : i32
    %c0_i32_1 = arith.constant 0 : i32
    return %c0_i32, %c0_i32_0 : i32, i32
  }
  func.func @transform_9(%arg0: i32) -> (i32, i32) {
    %c0_i32 = arith.constant 0 : i32
    %c0_i32_0 = arith.constant 0 : i32
    return %arg0, %c0_i32 : i32, i32
  }
}

</mosaic_0001>

<bundles_post_ra>
// kernel: tpu_custom_call.1
= control target key start
LH: loop header
LB: loop body
LE: loop exit
PB: predicated region body
PF: predicated region fallthrough
CT: control target
= control target key end

     0   :  { %vm48_vm0 = vcmask 1043456   ;;  %vm44_vm1 = vcmask 31744   ;;  %v603_v1 = vmov 0.0   ;;  %vm604_vm2 = vmmov 0   ;;  %s723_s0 = inlined_call_operand.vmem [shape: f32[2,4], index: 0, kind: input, shape index: {}]   ;;  %s724_s1 = inlined_call_operand.vmem [shape: f32[2,8,4], index: 1, kind: input, shape index: {}]   ;;  %s725_s2 = inlined_call_operand.vmem [shape: f32[4,32], index: 2, kind: input, shape index: {}]   ;;  %s726_s3 = inlined_call_operand.vmem [shape: f32[4,32], index: 3, kind: input, shape index: {}]   ;;  %s727_s4 = inlined_call_operand.vmem [shape: f32[1,32], index: 4, kind: input, shape index: {}]   ;;  %s728_s5 = inlined_call_operand.vmem [shape: f32[1,32], index: 5, kind: input, shape index: {}]   ;;  %s729_s6 = inlined_call_operand.vmem [shape: f32[4,4], index: 6, kind: input, shape index: {}]   ;;  %s730_s7 = inlined_call_operand.vmem [shape: f32[4,4], index: 7, kind: input, shape index: {}]   ;;  %s731_s8 = inlined_call_operand.vmem [shape: f32[1,4], index: 8, kind: input, shape index: {}]   ;;  %s732_s9 = inlined_call_operand.hbm [shape: f32[2,4], index: 9, kind: output, shape index: {}]  }
   0x1   :  { %v36_v0 = vld [vmem:[%s725_s2] sm:$0xf]  ;;  %548 = vmatprep.subr.mxu0 %v603_v1  ;;  %550 = vmatprep.mubr.msk.f32.mxu0 %vm604_vm2, %v603_v1  ;;  %v680_v5 = vld [vmem:[%s724_s1 + $0x8] sm:$0xff] }
   0x2   :  { %v665_v2 = vld [vmem:[%s723_s0] sm:$0x3]  ;;  %549 = vmatpush3.msk.msra.mxu0 %vm48_vm0, %v36_v0 }
   0x3   :  { %v122_v3 = vld [vmem:[%s726_s3] sm:$0xf] }
   0x4   :  { %v673_v4 = vld [vmem:[%s724_s1] sm:$0xff]  ;;  %553 = vmatprep.subr.msk.mxu1 %vm48_vm0, %v122_v3 }
   0x5   :  { %14 = vsyncpa [#allocation3], 0  ;;  %551 = vmatmul.mubr.msk.f32.vlgmr.msra.gmra.mxu0 %vm44_vm1, %v665_v2  ;;  %554 = vmatpush3.msk.msra.mxu1 %vm48_vm0, %v122_v3  ;;  %v605_v6 = vmov 1966171168   ;;  %v211_v8 = vlaneseq  ;;  %v527_v11 = vld [vmem:[%s727_s4] ss:$0 sm:$0xff] }
   0x6   :  { %555 = vmatprep.mubr.msk.f32.mxu1 %vm44_vm1, %v673_v4  ;;  %558 = vmatprep.subr.mxu0 %v603_v1  ;;  %v209_v7 = vunpack.c.l.s4 %v605_v6  ;;  %v533_v28 = vld [vmem:[%s728_s5] ss:$0 sm:$0xff]  ;;  %vm257_vm5 = vcmask 261120   ;;  %vm276_vm6 = vcmask 1041409   ;;  %vm279_vm7 = vcmask 58368   ;;  %s607_s21 = smov [#allocation2]  }
   0x7   :  { %556 = vmatmul.mubr.msk.f32.vlgmr.msra.gmra.mxu1 %vm44_vm1, %v680_v5  ;;  %563 = vmatprep.subr.mxu1 %v603_v1  ;;  %v212_v10 = vshrl.u32 %v211_v8, 7  ;;  %v267_v36 = vand.u32 127, %v211_v8  ;;  %v606_v44 = vmov 0   ;;  %v347_v61 = vld [vmem:[%s730_s7] sm:$0xf]  ;;  %s519_s22 = sshll.u32 %s607_s21, 4  ;;  %s520_s22 = int_to_ptr.vmem [resolvable:$true] %s519_s22 }
   0x8   :  { %565 = vmatprep.mubr.msk.f32.mxu1 %vm604_vm2, %v603_v1  ;;  %560 = vmatprep.mubr.msk.f32.mxu0 %vm604_vm2, %v603_v1  ;;  %v210_v9 = vunpack.c.0.s8 %v209_v7  ;;  %v346_v62 = vld [vmem:[%s729_s6] sm:$0xf]  ;;  %vm511_vm9 = vcmask 25600   ;;  %s581_s23 = scalar_lea.vmem %s520_s22, 32  ;;  %p586_p1 = scmp.lt.s32.totalorder %s520_s22, %s520_s22 }
   0x9   :  { %v232_v17 = vsub.s32 0, %v212_v10  ;;  %v270_v38 = vsub.s32 %v267_v36, %v212_v10  ;;  %574 = vset.pattern.permute.xlu0 %v606_v44  ;;  %573 = vset.pattern.permute.xlu1 %v606_v44  ;;  %v290_v45 = vsub.s32 1, %v212_v10  ;;  %p582_p0 = scmp.ne.s32.totalorder %s520_s22, %s581_s23  ;;  %p587_p2 = scmp.lt.s32.totalorder %s581_s23, %s581_s23 }
   0xa   :  { %v213_v12 = vsub.s32 %v210_v9, %v212_v10  ;;  %559 = vmatpush3.msk.msra.mxu0 %vm48_vm0, %v347_v61  ;;  %564 = vmatpush3.msk.msra.mxu1 %vm48_vm0, %v346_v62 }
   0xb   :  { %566 = vmatmul.mubr.msk.f32.vlgmr.msra.gmra.mxu1 %vm44_vm1, %v665_v2  ;;  %p588_p3 = por %p587_p2, %p586_p1 }
   0xd   :  { %p589_p4 = pnand %p588_p3, %p582_p0 }
  0xc5   :  { %v118_v13 = vpop.f32.mrf.mxu0 }
  0xc6   :  { %v119_v14 = vadd.f32 %v527_v11, %v118_v13 }
  0xc7   :  { %v552_v15 = vpop.f32.mrf.mxu0  ;;  %v557_v18 = vpop.f32.mrf.mxu1 }
  0xc8   :  { %v214_v16 = vrot.slane %v119_v14, %v213_v12 }
  0xc9   :  { %v198_v23 = vpop.f32.mrf.mxu1 }
  0xca   :  { %v215_v19 = vcombine.high %v214_v16, %v214_v16  ;;  %v222_v20 = vrot.slane %v214_v16, %v213_v12 }
  0xcc   :  { %v229_v21 = vrot.slane %v215_v19, %v213_v12  ;;  %v233_v22 = vrot.slane %v222_v20, %v232_v17 }
  0xce   :  { %v237_v24 = vrot.slane %v229_v21, %v232_v17  ;;  %v240_v25 = vadd.f32 %v233_v22, %v198_v23  ;;  %v496_v22 = vpop.f32.mrf.mxu1 }
  0xd0   :  { %v241_v26 = vadd.f32 %v557_v18, %v237_v24  ;;  %v244_v27 = vmul.f32 0.01, %v240_v25  ;;  %vm242_vm3 = vcmp.ge.f32.partialorder %v240_v25, 0.0  ;;  %v567_v23 = vpop.f32.mrf.mxu1 }
  0xd2   :  { %vm243_vm4 = vcmp.ge.f32.partialorder %v241_v26, 0.0  ;;  %v245_v29 = vmul.f32 0.01, %v241_v26  ;;  %v246_v30 = vsel %vm242_vm3, %v240_v25, %v244_v27  ;;  %v538_v25 = vld [vmem:[%s731_s8] ss:$0 sm:$0xff] }
  0xd3   :  { %v255_v31 = vmul.f32 %v533_v28, %v246_v30 }
  0xd4   :  { %v247_v32 = vsel %vm243_vm4, %v241_v26, %v245_v29 }
  0xd5   :  { %v258_v33 = vsel %vm257_vm5, %v255_v31, 0.0  ;;  %v256_v34 = vmul.f32 %v533_v28, %v247_v32 }
  0xd6   :  { %259 = vadd.xlane.f32.xlu0 %v258_v33 }
  0xd7   :  { %v261_v35 = vsel %vm257_vm5, %v256_v34, 0.0 }
  0xda   :  { %262 = vadd.xlane.f32.xlu0 %v261_v35 }
 0x15f   :  { %v260_v37 = vpop.xlane.xlu0 %259 }
 0x160   :  { %v271_v40 = vrot.slane %v260_v37, %v270_v38 }
 0x163   :  { %v263_v39 = vpop.xlane.xlu0 %262 }
 0x164   :  { %v275_v41 = vrot.slane %v263_v39, %v270_v38 }
 0x166   :  { %v277_v42 = vsel %vm276_vm6, %v275_v41, %v271_v40 }
 0x167   :  { %v280_v43 = vsel %vm279_vm7, %v277_v42, -inf }
 0x168   :  { %281 = vmax.xlane.f32.xlu1 %v280_v43 }
 0x1f1   :  { %v282_v46 = vpop.xlane.xlu1 %281 }
 0x1f2   :  { %v287_v47 = vrot.slane %v282_v46, %v232_v17  ;;  %v291_v48 = vrot.slane %v282_v46, %v290_v45 }
 0x1f4   :  { %v294_v49 = vsub.f32 %v260_v37, %v287_v47  ;;  %v295_v50 = vsub.f32 %v263_v39, %v291_v48 }
 0x1f6   :  { %v296_v51 = vmul.f32 1.442695, %v294_v49  ;;  %v298_v52 = vmul.f32 1.442695, %v295_v50 }
 0x1f8   :  { %575 = vpow2.f32 %v296_v51 }
 0x1f9   :  { %577 = vpow2.f32 %v298_v52 }
 0x205   :  { %v576_v53 = vpop.eup %575 }
 0x206   :  { %v578_v54 = vpop.eup %577  ;;  %303 = vperm.xlu1 %573, %v576_v53  }
 0x207   :  { %306 = vperm.xlu0 %574, %v578_v54  }
 0x281   :  { %v304_v55 = vpop.permute.xlu1 %303 }
 0x282   :  { %v307_v56 = vpop.permute.xlu0 %306  ;;  %v311_v57 = vrot.slane %v304_v55, %v270_v38  ;;  %v323_v0 = vmul.f32 %v304_v55, %v673_v4 }
 0x283   :  { %v315_v58 = vrot.slane %v307_v56, %v270_v38  ;;  %v324_v63 = vmul.f32 %v307_v56, %v680_v5 }
 0x284   :  { %v325_v3 = vsel %vm44_vm1, %v323_v0, 0.0 }
 0x285   :  { %v316_v59 = vsel %vm276_vm6, %v315_v58, %v311_v57  ;;  %v332_v1 = vsel %vm44_vm1, %v324_v63, 0.0  ;;  %v326_v7 = vrot.slane %v325_v3, 4 }
 0x286   :  { %v318_v60 = vsel %vm279_vm7, %v316_v59, 0.0  ;;  %v333_v6 = vrot.slane %v332_v1, 4 }
 0x287   :  { %319 = vadd.xlane.f32.xlu1 %v318_v60  ;;  %v327_v10 = vadd.f32 %v326_v7, %v325_v3 }
 0x288   :  { %v334_v8 = vadd.f32 %v333_v6, %v332_v1 }
 0x289   :  { %v328_v12 = vrot.slane %v327_v10, 2 }
 0x28a   :  { %v335_v11 = vrot.slane %v334_v8, 2 }
 0x28b   :  { %v329_v14 = vadd.f32 %v328_v12, %v327_v10 }
 0x28c   :  { %v336_v13 = vadd.f32 %v335_v11, %v334_v8 }
 0x28d   :  { %v330_v2 = vrot.slane %v329_v14, 1 }
 0x28e   :  { %v337_v15 = vrot.slane %v336_v13, 1 }
 0x28f   :  { %v331_v4 = vadd.f32 %v330_v2, %v329_v14 }
 0x290   :  { %v338_v5 = vadd.f32 %v337_v15, %v336_v13 }
 0x310   :  { %v320_v9 = vpop.xlane.xlu1 %319 }
 0x311   :  { %579 = vrcp.f32 %v320_v9 }
 0x31e   :  { %v580_v16 = vpop.eup %579 }
 0x31f   :  { %v341_v17 = vrot.slane %v580_v16, 1  ;;  %v344_v19 = vmul.f32 %v580_v16, %v331_v4 }
 0x321   :  { %v345_v18 = vmul.f32 %v341_v17, %v338_v5 }
 0x323   :  { %v350_v20 = vrot.slane %v345_v18, 7 }
 0x325   :  { %v351_v21 = vsel %vm276_vm6, %v350_v20, %v344_v19 }
 0x326   :  { %561 = vmatmul.mubr.msk.f32.vlgmr.msra.gmra.mxu0 %vm44_vm1, %v351_v21 }
 0x3e6   :  { %v423_v24 = vpop.f32.mrf.mxu0 }
 0x3e7   :  { %v497_v26 = vadd.f32 %v496_v22, %v423_v24 }
 0x3e8   :  { %v562_v27 = vpop.f32.mrf.mxu0 }
 0x3e9   :  { %v507_v28 = vadd.f32 %v538_v25, %v497_v26 }
 0x3eb   :  { %v509_v29 = vmul.f32 0.01, %v507_v28  ;;  %vm508_vm8 = vcmp.ge.f32.partialorder %v507_v28, 0.0 }
 0x3ed   :  { %v510_v30 = vsel %vm508_vm8, %v507_v28, %v509_v29 }
 0x3ee   :  { %512 = vst.msk [vmem:[#allocation2] sm:$0x3] %vm511_vm9, %v510_v30 }
 0x3ef   :  { %592 = shalt.err (!%p589_p4)
}
 0x3f0   :  { %522 = dma.vmem_to_hbm [thread:$0]  %s520_s22, 32, %s732_s9, [#allocation3]  }
 0x3f1   :  { %601 = dma.done.wait [#allocation3], 32  }
 0x3f2   :  { %602 = vsyncadd [#allocation3], 4294967264 }
 0x3f3   :  { %526 = vsyncpa [#allocation3], 1 }

</bundles_post_ra>
